<compile_context>
chip_gen: v5e
topology: v5e:2x2
jax: 0.10.0
libtpu: 0.0.40
codegen_flags: <defaults>
</compile_context>

<pallas_src>
import functools

import jax
import jax.numpy as jnp
from jax.experimental import pallas as pl
from jax.experimental.pallas import tpu as pltpu

LANES = 128


def _predloss_kernel(logits_ref, target_ref, predloss_ref,
                     loss_sum_ref, sq_sum_ref, *, epsilon, ignore_index):
    j = pl.program_id(1)

    # Per-batch accumulators live in the resident output blocks; zero them on
    # the first pixel-tile of each batch row.
    @pl.when(j == 0)
    def _():
        loss_sum_ref[...] = jnp.zeros_like(loss_sum_ref)
        sq_sum_ref[...] = jnp.zeros_like(sq_sum_ref)

    x = logits_ref[...].astype(jnp.float32)           # (C, TR, 128)
    num_classes = x.shape[0]

    tgt = target_ref[...]                             # (TR, 128) int32
    if ignore_index is not None:
        pad = tgt == ignore_index
        tgt = jnp.where(pad, 0, tgt)

    # Numerically stable log-sum-exp over classes (leading axis -> VPU chain,
    # exp/log on the EUP).
    m = jnp.max(x, axis=0)                            # (TR, 128)
    sumexp = jnp.sum(jnp.exp(x - m[None]), axis=0)    # (TR, 128)
    lse = m + jnp.log(sumexp)                         # per-pixel logsumexp

    # Gather x[target] via one-hot select/add over classes; also sum over C.
    cls = jax.lax.broadcasted_iota(jnp.int32, x.shape, 0)
    x_t = jnp.sum(jnp.where(cls == tgt[None], x, 0.0), axis=0)   # (TR, 128)
    x_sum = jnp.sum(x, axis=0)                                   # (TR, 128)

    nll = lse - x_t                                   # -log p[target]
    smooth = num_classes * lse - x_sum                # -sum_c log p[c]

    if ignore_index is not None:
        nll = jnp.where(pad, 0.0, nll)
        smooth = jnp.where(pad, 0.0, smooth)

    eps_i = epsilon / num_classes
    loss_map = nll * (1.0 - epsilon) + smooth * eps_i            # (TR, 128)

    diff = predloss_ref[...].astype(jnp.float32) - loss_map

    # Lane-dense running sums (only a sublane reduce per step); the final
    # cross-lane / cross-batch reduce happens once in the wrapper.
    loss_sum_ref[...] += jnp.sum(loss_map, axis=0, keepdims=True)   # (1, 128)
    sq_sum_ref[...] += jnp.sum(diff * diff, axis=0, keepdims=True)  # (1, 128)


def pred_loss_loss(pred, pred_loss, target, *,
                   smooth_factor=0.05, ignore_index=None, reduction='mean',
                   sce_loss_weight=1.0, predlossloss_weight=0.5,
                   smooth_epoch=4, epoch=4,
                   max_pixels_per_step=8192,
                   logits_block_bytes=4 * 1024 * 1024):
    """Forward pass of PredLossLoss.

    pred:      [B, C, H, W] float logits (NCHW, class dim = 1), any float dtype
    pred_loss: [B, H, W]    float predicted-loss map
    target:    [B, H, W]    int labels
    Returns {'main_loss', 'predloss_loss'} (or just main_loss when the
    epoch-scaled predlossloss_weight is 0), matching the PyTorch module.
    """
    B, C, H, W = pred.shape
    N = H * W
    assert N % LANES == 0, "H*W must be a multiple of 128"
    rows_total = N // LANES

    # Rows of 128 pixels per grid step: as large as possible while (a) dividing
    # the image, (b) <= max_pixels_per_step, and (c) keeping the double-buffered
    # logits block comfortably inside VMEM on v5e/v6e/v7x.
    bytes_per_row = C * LANES * jnp.dtype(pred.dtype).itemsize
    tr = min(rows_total, max(1, max_pixels_per_step // LANES),
             max(1, logits_block_bytes // bytes_per_row))
    tr = max(tr, 1)
    while rows_total % tr != 0:
        tr -= 1
    J = rows_total // tr

    # All reshapes below are contiguous (free) — no transposes, no dtype casts.
    logits = pred.reshape(B, C, J, tr, LANES)               # native dtype
    tgt = target.reshape(B, J, tr, LANES).astype(jnp.int32)
    pl_map = pred_loss.reshape(B, J, tr, LANES)

    kernel = functools.partial(_predloss_kernel,
                               epsilon=float(smooth_factor),
                               ignore_index=ignore_index)

    loss_sum, sq_sum = pl.pallas_call(
        kernel,
        out_shape=(jax.ShapeDtypeStruct((B, 1, LANES), jnp.float32),
                   jax.ShapeDtypeStruct((B, 1, LANES), jnp.float32)),
        grid_spec=pltpu.PrefetchScalarGridSpec(
            num_scalar_prefetch=0,
            grid=(B, J),
            in_specs=[
                pl.BlockSpec((None, C, None, tr, LANES),
                             lambda b, j: (b, 0, j, 0, 0)),
                pl.BlockSpec((None, None, tr, LANES),
                             lambda b, j: (b, j, 0, 0)),
                pl.BlockSpec((None, None, tr, LANES),
                             lambda b, j: (b, j, 0, 0)),
            ],
            out_specs=[
                pl.BlockSpec((None, 1, LANES), lambda b, j: (b, 0, 0)),
                pl.BlockSpec((None, 1, LANES), lambda b, j: (b, 0, 0)),
            ],
        ),
        compiler_params=pltpu.CompilerParams(
            dimension_semantics=("parallel", "arbitrary")),
    )(logits, tgt, pl_map)

    n_total = B * N
    total_loss = jnp.sum(loss_sum)
    total_sq = jnp.sum(sq_sum)

    # NOTE: the PyTorch module applies `.mean()` / F.mse_loss over ALL pixels;
    # ignored pixels contribute 0 to the numerator but still count in the
    # denominator (this is NOT CrossEntropyLoss's ignore_index-aware mean).
    if reduction == 'sum':
        sce_loss = total_loss * sce_loss_weight
    else:  # 'mean'
        sce_loss = (total_loss / n_total) * sce_loss_weight
    mse = total_sq / n_total

    # TODO(synk): in the original module `epoch` comes from the external
    # global_dict['trainer'].epoch_idx; here it is a plain wrapper argument.
    w = predlossloss_weight
    if epoch < smooth_epoch:
        w = w * (float(epoch) / smooth_epoch)
    predloss_loss = mse * w

    main_loss = sce_loss
    # TODO(synk): self.extra_loss is None by default; an arbitrary extra-loss
    # callable has no generic Pallas equivalent and is not implemented here.

    if w == 0:
        return main_loss
    return {'main_loss': main_loss, 'predloss_loss': predloss_loss}


if __name__ == "__main__":
    key = jax.random.PRNGKey(0)
    k1, k2, k3 = jax.random.split(key, 3)

    B, C, H, W = 2, 4, 16, 16
    pred = jax.random.normal(k1, (B, C, H, W), jnp.float32)
    target = jax.random.randint(k2, (B, H, W), 0, C, jnp.int32)
    pred_loss = jax.random.uniform(k3, (B, H, W), jnp.float32)

    eps = 0.05

    def ref_fwd(pred, pred_loss, target, ignore_index=None):
        # Pure-JAX reference with the same semantics as the PyTorch forward.
        logp = jax.nn.log_softmax(pred.astype(jnp.float32), axis=1)
        t = target.astype(jnp.int32)
        if ignore_index is not None:
            pad = t == ignore_index
            t = jnp.where(pad, 0, t)
        nll = -jnp.take_along_axis(logp, t[:, None], axis=1)[:, 0]
        smooth = -jnp.sum(logp, axis=1)
        if ignore_index is not None:
            nll = jnp.where(pad, 0.0, nll)
            smooth = jnp.where(pad, 0.0, smooth)
        loss_map = nll * (1.0 - eps) + smooth * (eps / C)
        main = loss_map.mean() * 1.0
        pll = jnp.mean((pred_loss - loss_map) ** 2) * 0.5
        return main, pll

    # Default path (no ignore_index).
    out = pred_loss_loss(pred, pred_loss, target, epoch=4)
    out = jax.block_until_ready(out)
    ref_main, ref_pll = ref_fwd(pred, pred_loss, target)
    assert jnp.allclose(out['main_loss'], ref_main, rtol=1e-5, atol=1e-5), \
        (out['main_loss'], ref_main)
    assert jnp.allclose(out['predloss_loss'], ref_pll, rtol=1e-5, atol=1e-5), \
        (out['predloss_loss'], ref_pll)

    # ignore_index path (ignored pixels zeroed in loss_map, plain mean).
    tgt_ign = target.at[:, :4, :].set(255)
    out2 = pred_loss_loss(pred, pred_loss, tgt_ign, ignore_index=255, epoch=4)
    out2 = jax.block_until_ready(out2)
    ref_main2, ref_pll2 = ref_fwd(pred, pred_loss, tgt_ign, ignore_index=255)
    assert jnp.allclose(out2['main_loss'], ref_main2, rtol=1e-5, atol=1e-5), \
        (out2['main_loss'], ref_main2)
    assert jnp.allclose(out2['predloss_loss'], ref_pll2, rtol=1e-5, atol=1e-5), \
        (out2['predloss_loss'], ref_pll2)

    print("KERNEL_OK")
</pallas_src>

<mosaic_0001>
module attributes {stable_mosaic.version = 11 : i64} {
  func.func @_predloss_kernel(%arg0: i32, %arg1: i32, %arg2: memref<1x4x1x2x128xf32, #tpu.memory_space<vmem>>, %arg3: memref<1x1x2x128xi32, #tpu.memory_space<vmem>>, %arg4: memref<1x1x2x128xf32, #tpu.memory_space<vmem>>, %arg5: memref<1x1x128xf32, #tpu.memory_space<vmem>>, %arg6: memref<1x1x128xf32, #tpu.memory_space<vmem>>) attributes {dimension_semantics = [#tpu.dimension_semantics<parallel>, #tpu.dimension_semantics<arbitrary>], iteration_bounds = array<i64: 2, 1>, scalar_prefetch = 0 : i64, scratch_operands = 0 : i64, tpu.core_type = #tpu.core_type<tc>, window_params = [{transform_indices = @transform_0, window_bounds = array<i64: 1, 4, 1, 2, 128>}, {transform_indices = @transform_1, window_bounds = array<i64: 1, 1, 2, 128>}, {transform_indices = @transform_2, window_bounds = array<i64: 1, 1, 2, 128>}, {transform_indices = @transform_3, window_bounds = array<i64: 1, 1, 128>}, {transform_indices = @transform_4, window_bounds = array<i64: 1, 1, 128>}]} {
    %c0_i32 = arith.constant 0 : i32
    %0 = arith.cmpi eq, %arg1, %c0_i32 : i32
    %1 = arith.extui %0 : i1 to i32
    %c0_i32_0 = arith.constant 0 : i32
    %2 = arith.cmpi ne, %1, %c0_i32_0 : i32
    scf.if %2 {
      %cst_34 = arith.constant 0.000000e+00 : f32
      %52 = vector.broadcast %cst_34 : f32 to vector<1x128xf32>
      %c0_35 = arith.constant 0 : index
      %c0_36 = arith.constant 0 : index
      %c0_37 = arith.constant 0 : index
      %53 = vector.load %arg5[%c0_35, %c0_36, %c0_37] : memref<1x1x128xf32, #tpu.memory_space<vmem>>, vector<1x1x128xf32>
      %54 = vector.shape_cast %53 : vector<1x1x128xf32> to vector<1x128xf32>
      %55 = vector.shape_cast %52 : vector<1x128xf32> to vector<1x1x128xf32>
      tpu.vector_store %arg5[%c0_35, %c0_36, %c0_37], %55 {strides = array<i32>} : memref<1x1x128xf32, #tpu.memory_space<vmem>>, vector<1x1x128xf32>,
      %cst_38 = arith.constant 0.000000e+00 : f32
      %56 = vector.broadcast %cst_38 : f32 to vector<1x128xf32>
      %c0_39 = arith.constant 0 : index
      %c0_40 = arith.constant 0 : index
      %c0_41 = arith.constant 0 : index
      %57 = vector.load %arg6[%c0_39, %c0_40, %c0_41] : memref<1x1x128xf32, #tpu.memory_space<vmem>>, vector<1x1x128xf32>
      %58 = vector.shape_cast %57 : vector<1x1x128xf32> to vector<1x128xf32>
      %59 = vector.shape_cast %56 : vector<1x128xf32> to vector<1x1x128xf32>
      tpu.vector_store %arg6[%c0_39, %c0_40, %c0_41], %59 {strides = array<i32>} : memref<1x1x128xf32, #tpu.memory_space<vmem>>, vector<1x1x128xf32>,
    } else {
    }
    %c0 = arith.constant 0 : index
    %c0_1 = arith.constant 0 : index
    %c0_2 = arith.constant 0 : index
    %c0_3 = arith.constant 0 : index
    %c0_4 = arith.constant 0 : index
    %3 = vector.load %arg2[%c0, %c0_1, %c0_2, %c0_3, %c0_4] : memref<1x4x1x2x128xf32, #tpu.memory_space<vmem>>, vector<1x4x1x2x128xf32>
    %4 = vector.shape_cast %3 : vector<1x4x1x2x128xf32> to vector<4x2x128xf32>
    %c0_5 = arith.constant 0 : index
    %c0_6 = arith.constant 0 : index
    %c0_7 = arith.constant 0 : index
    %c0_8 = arith.constant 0 : index
    %5 = vector.load %arg3[%c0_5, %c0_6, %c0_7, %c0_8] : memref<1x1x2x128xi32, #tpu.memory_space<vmem>>, vector<1x1x2x128xi32>
    %6 = vector.shape_cast %5 : vector<1x1x2x128xi32> to vector<2x128xi32>
    %cst = arith.constant dense<0xFF800000> : vector<2x128xf32>
    %7 = vector.multi_reduction <maximumf>, %4, %cst [0] : vector<4x2x128xf32> to vector<2x128xf32>
    %8 = vector.shape_cast %7 : vector<2x128xf32> to vector<1x2x128xf32>
    %9 = vector.broadcast %8 : vector<1x2x128xf32> to vector<4x2x128xf32>
    %10 = arith.subf %4, %9 : vector<4x2x128xf32>
    %11 = math.exp %10 : vector<4x2x128xf32>
    %cst_9 = arith.constant dense<0.000000e+00> : vector<2x128xf32>
    %12 = vector.multi_reduction <add>, %11, %cst_9 [0] : vector<4x2x128xf32> to vector<2x128xf32>
    %13 = math.log %12 : vector<2x128xf32>
    %14 = arith.addf %7, %13 : vector<2x128xf32>
    %15 = tpu.iota {dimensions = array<i32: 0>} : vector<4x2x128xi32>
    %16 = vector.shape_cast %6 : vector<2x128xi32> to vector<1x2x128xi32>
    %17 = vector.broadcast %16 : vector<1x2x128xi32> to vector<4x2x128xi32>
    %18 = arith.cmpi eq, %15, %17 : vector<4x2x128xi32>
    %cst_10 = arith.constant 0.000000e+00 : f32
    %19 = vector.broadcast %cst_10 : f32 to vector<4x2x128xf32>
    %20 = arith.select %18, %4, %19 : vector<4x2x128xi1>, vector<4x2x128xf32>
    %cst_11 = arith.constant dense<0.000000e+00> : vector<2x128xf32>
    %21 = vector.multi_reduction <add>, %20, %cst_11 [0] : vector<4x2x128xf32> to vector<2x128xf32>
    %cst_12 = arith.constant dense<0.000000e+00> : vector<2x128xf32>
    %22 = vector.multi_reduction <add>, %4, %cst_12 [0] : vector<4x2x128xf32> to vector<2x128xf32>
    %23 = arith.subf %14, %21 : vector<2x128xf32>
    %cst_13 = arith.constant 4.000000e+00 : f32
    %24 = vector.broadcast %cst_13 : f32 to vector<2x128xf32>
    %25 = arith.mulf %24, %14 : vector<2x128xf32>
    %26 = arith.subf %25, %22 : vector<2x128xf32>
    %cst_14 = arith.constant 0.949999988 : f32
    %27 = vector.broadcast %cst_14 : f32 to vector<2x128xf32>
    %28 = arith.mulf %23, %27 : vector<2x128xf32>
    %cst_15 = arith.constant 1.250000e-02 : f32
    %29 = vector.broadcast %cst_15 : f32 to vector<2x128xf32>
    %30 = arith.mulf %26, %29 : vector<2x128xf32>
    %31 = arith.addf %28, %30 : vector<2x128xf32>
    %c0_16 = arith.constant 0 : index
    %c0_17 = arith.constant 0 : index
    %c0_18 = arith.constant 0 : index
    %c0_19 = arith.constant 0 : index
    %32 = vector.load %arg4[%c0_16, %c0_17, %c0_18, %c0_19] : memref<1x1x2x128xf32, #tpu.memory_space<vmem>>, vector<1x1x2x128xf32>
    %33 = vector.shape_cast %32 : vector<1x1x2x128xf32> to vector<2x128xf32>
    %34 = arith.subf %33, %31 : vector<2x128xf32>
    %c0_20 = arith.constant 0 : index
    %c0_21 = arith.constant 0 : index
    %c0_22 = arith.constant 0 : index
    %35 = vector.load %arg5[%c0_20, %c0_21, %c0_22] : memref<1x1x128xf32, #tpu.memory_space<vmem>>, vector<1x1x128xf32>
    %36 = vector.shape_cast %35 : vector<1x1x128xf32> to vector<1x128xf32>
    %cst_23 = arith.constant dense<0.000000e+00> : vector<128xf32>
    %37 = vector.multi_reduction <add>, %31, %cst_23 [0] : vector<2x128xf32> to vector<128xf32>
    %38 = vector.shape_cast %37 : vector<128xf32> to vector<1x128xf32>
    %39 = arith.addf %36, %38 : vector<1x128xf32>
    %c0_24 = arith.constant 0 : index
    %c0_25 = arith.constant 0 : index
    %c0_26 = arith.constant 0 : index
    %40 = vector.load %arg5[%c0_24, %c0_25, %c0_26] : memref<1x1x128xf32, #tpu.memory_space<vmem>>, vector<1x1x128xf32>
    %41 = vector.shape_cast %40 : vector<1x1x128xf32> to vector<1x128xf32>
    %42 = vector.shape_cast %39 : vector<1x128xf32> to vector<1x1x128xf32>
    tpu.vector_store %arg5[%c0_24, %c0_25, %c0_26], %42 {strides = array<i32>} : memref<1x1x128xf32, #tpu.memory_space<vmem>>, vector<1x1x128xf32>,
    %c0_27 = arith.constant 0 : index
    %c0_28 = arith.constant 0 : index
    %c0_29 = arith.constant 0 : index
    %43 = vector.load %arg6[%c0_27, %c0_28, %c0_29] : memref<1x1x128xf32, #tpu.memory_space<vmem>>, vector<1x1x128xf32>
    %44 = vector.shape_cast %43 : vector<1x1x128xf32> to vector<1x128xf32>
    %45 = arith.mulf %34, %34 : vector<2x128xf32>
    %cst_30 = arith.constant dense<0.000000e+00> : vector<128xf32>
    %46 = vector.multi_reduction <add>, %45, %cst_30 [0] : vector<2x128xf32> to vector<128xf32>
    %47 = vector.shape_cast %46 : vector<128xf32> to vector<1x128xf32>
    %48 = arith.addf %44, %47 : vector<1x128xf32>
    %c0_31 = arith.constant 0 : index
    %c0_32 = arith.constant 0 : index
    %c0_33 = arith.constant 0 : index
    %49 = vector.load %arg6[%c0_31, %c0_32, %c0_33] : memref<1x1x128xf32, #tpu.memory_space<vmem>>, vector<1x1x128xf32>
    %50 = vector.shape_cast %49 : vector<1x1x128xf32> to vector<1x128xf32>
    %51 = vector.shape_cast %48 : vector<1x128xf32> to vector<1x1x128xf32>
    tpu.vector_store %arg6[%c0_31, %c0_32, %c0_33], %51 {strides = array<i32>} : memref<1x1x128xf32, #tpu.memory_space<vmem>>, vector<1x1x128xf32>,
    return
  }
  func.func @transform_0(%arg0: i32, %arg1: i32) -> (i32, i32, i32, i32, i32) {
    %c0_i32 = arith.constant 0 : i32
    %c0_i32_0 = arith.constant 0 : i32
    %c0_i32_1 = arith.constant 0 : i32
    %c0_i32_2 = arith.constant 0 : i32
    return %arg0, %c0_i32, %arg1, %c0_i32_0, %c0_i32_1 : i32, i32, i32, i32, i32
  }
  func.func @transform_1(%arg0: i32, %arg1: i32) -> (i32, i32, i32, i32) {
    %c0_i32 = arith.constant 0 : i32
    %c0_i32_0 = arith.constant 0 : i32
    %c0_i32_1 = arith.constant 0 : i32
    return %arg0, %arg1, %c0_i32, %c0_i32_0 : i32, i32, i32, i32
  }
  func.func @transform_2(%arg0: i32, %arg1: i32) -> (i32, i32, i32, i32) {
    %c0_i32 = arith.constant 0 : i32
    %c0_i32_0 = arith.constant 0 : i32
    %c0_i32_1 = arith.constant 0 : i32
    return %arg0, %arg1, %c0_i32, %c0_i32_0 : i32, i32, i32, i32
  }
  func.func @transform_3(%arg0: i32, %arg1: i32) -> (i32, i32, i32) {
    %c0_i32 = arith.constant 0 : i32
    %c0_i32_0 = arith.constant 0 : i32
    %c0_i32_1 = arith.constant 0 : i32
    return %arg0, %c0_i32, %c0_i32_0 : i32, i32, i32
  }
  func.func @transform_4(%arg0: i32, %arg1: i32) -> (i32, i32, i32) {
    %c0_i32 = arith.constant 0 : i32
    %c0_i32_0 = arith.constant 0 : i32
    %c0_i32_1 = arith.constant 0 : i32
    return %arg0, %c0_i32, %c0_i32_0 : i32, i32, i32
  }
}

</mosaic_0001>

<bundles_post_ra>
// kernel: tpu_custom_call.1
= control target key start
LH: loop header
LB: loop body
LE: loop exit
PB: predicated region body
PF: predicated region fallthrough
CT: control target
= control target key end

     0   :  { %s1157_s0 = inlined_call_operand.hbm [shape: f32[2,4,1,2,128], index: 0, kind: input, shape index: {}]   ;;  %s1158_s1 = inlined_call_operand.hbm [shape: s32[2,1,2,128], index: 1, kind: input, shape index: {}]   ;;  %s1159_s2 = inlined_call_operand.hbm [shape: f32[2,1,2,128], index: 2, kind: input, shape index: {}]   ;;  %s1160_s3 = inlined_call_operand.hbm [shape: f32[2,1,128], index: 3, kind: output, shape index: {0}]   ;;  %s1161_s4 = inlined_call_operand.hbm [shape: f32[2,1,128], index: 4, kind: output, shape index: {1}]  }
   0x1   :  { %1167 = sst [smem:[#allocation19_spill]] %s1158_s1 }
   0x2   :  { %1168 = sst [smem:[#allocation20_spill]] %s1159_s2 }
   0x3   :  { %10 = vsyncpa [#allocation3], 0 }
   0x4   :  { %12 = vsyncpa [#allocation3 + $0x1], 0 }
   0x5   :  { %13 = vsyncpa [#allocation6], 0 }
   0x6   :  { %15 = vsyncpa [#allocation6 + $0x1], 0 }
   0x7   :  { %16 = vsyncpa [#allocation4], 0 }
   0x8   :  { %18 = vsyncpa [#allocation4 + $0x1], 0 }
   0x9   :  { %19 = vsyncpa [#allocation10], 0 }
   0xa   :  { %21 = vsyncpa [#allocation10 + $0x1], 0  ;;  %s940_s15 = smov 0   ;;  %s942_s16 = smov 0  }
   0xb   :  { %s944_s17 = smov 0   ;;  %s946_s18 = smov 0  }
   0xc   :  { %s948_s19 = smov 0   ;;  %s950_s20 = smov 0  }
   0xd LB: > { %1169 = sst [smem:[#allocation15_spill]] %s898_s17  ;;  %s971_s21 = sadd.s32 4294967295, %s910_s20   ;;  %s910_s20 = sphi %s950_s20, %s27_s20   ;;  %s906_s19 = sphi %s948_s19, %s1189_s19   ;;  %s902_s18 = sphi %s946_s18, %s1188_s18   ;;  %s898_s17 = sphi %s944_s17, %s1184_s17   ;;  %s894_s16 = sphi %s942_s16, %s1187_s16   ;;  %s890_s15 = sphi %s940_s15, %s1186_s15  }
   0xe   : > { %1170 = sst [smem:[#allocation16_spill]] %s910_s20  ;;  %s595_s22 = sadd.s32 4294967294, %s910_s20  }
   0xf   : > { %s39_s23 = sadd.s32 1, %s906_s19  ;;  %s48_s24 = sadd.s32 1, %s898_s17 }
  0x10   : > { %p41_p0 = scmp.ge.s32.totalorder %s39_s23, 2  ;;  %p55_p1 = scmp.ne.s32.totalorder %s898_s17, %s894_s16 }
  0x11   : > { %p56_p2 = scmp.eq.s32.totalorder %s910_s20, 0  ;;  %p61_p3 = scmp.ne.s32.totalorder %s894_s16, %s890_s15 }
  0x12   : > { %s1191_s23 = smov (%p41_p0, %s39_s23), 0  ;;  %p62_p5 = scmp.eq.s32.totalorder %s971_s21, 0 }
  0x13   : > { %1171 = sst [smem:[#allocation17_spill]] %s1191_s23  ;;  %p983_p4 = por %p56_p2, %p55_p1 }
  0x14   : > { %s43_s26 = ssub.s32 %s906_s19, %s1191_s23  ;;  %p141_p6 = scmp.eq.s32.totalorder %s971_s21, 1 }
  0x15   : > { %p46_p7 = scmp.eq.s32.totalorder %s43_s26, 0  ;;  %p991_p8 = por %p62_p5, %p61_p3 }
  0x16   : > { %p995_p9 = por %p141_p6, %p55_p1  ;;  %p147_p10 = scmp.eq.s32.totalorder %s595_s22, 1 }
  0x17   : > { %s1000_s29 = scalar_select %p46_p7, %s898_s17, %s48_s24  }
  0x18   : > { %p1002_p11 = por %p147_p10, %p61_p3  ;;  %p597_p12 = scmp.ge.s32.totalorder %s910_s20, 2 }
  0x19   : > { %1175 = sst [smem:[#allocation18_spill]] %s1000_s29  ;;  %p639_p13 = scmp.lt.s32.totalorder %s910_s20, 2 }
  0x1a   : > { %s1009_s5 = sand.u32 1, %s898_s17   ;;  %s216_s6 = sand.u32 1, %s910_s20  }
  0x1b   : > { %s1163_s7 = sshll.u32 %s1009_s5, 1  ;;  %p1015_p0 = pnand %p639_p13, %p983_p4 }
  0x1c   : > { %s602_s9 = sshll.u32 %s906_s19, 1  ;;  %s1178_s1 = sld [smem:[#allocation19_spill]] }
  0x1d   : > { %s220_s14 = scalar_lea.vmem [#allocation5], %s1163_s7  ;;  %s217_s24 = scalar_lea.sflag [#allocation6], %s216_s6 }
  0x1e   : > { %s229_s22 = sshll.u32 %s220_s14, 4  ;;  %s1179_s2 = sld [smem:[#allocation20_spill]]  ;;  %s230_s22 = int_to_ptr.vmem [resolvable:$true] %s229_s22 }
  0x1f   : > { %p605_p1 = scmp.ge.s32.totalorder %s910_s20, 1  ;;  %p254_p2 = scmp.lt.s32.totalorder %s910_s20, 3 }
  0x20   : > { %s598_s11 = sshll.u32 %s1009_s5, 3  ;;  %s912_s25 = smov 32  }
  0x21   : > { %p1032_p3 = pnand %p605_p1, %p254_p2  ;;  %s913_s26 = smov 2  }
  0x22   : > { %s225_s12 = scalar_lea.hbm %s1178_s1, %s602_s9  ;;  %s1181_s29 = sshll.u32 %s1009_s5, 1 }
  0x23   : > { %s227_s13 = sshll.u32 %s225_s12, 4  ;;  %s611_s12 = sshll.u32 %s906_s19, 3  ;;  %s228_s13 = int_to_ptr.hbm [resolvable:$true] %s227_s13 }
  0x24   : > { %628 = dma.hbm_to_vmem [thread:$0]  (!%p1015_p0), %s228_s13, 32, %s230_s22, %s217_s24  }
  0x25   : > { %s245_s23 = scalar_lea.hbm %s1179_s2, %s602_s9  ;;  %s203_s6 = scalar_lea.hbm %s1157_s0, %s611_s12 }
  0x26   : > { %s204_s13 = sshll.u32 %s203_s6, 4  ;;  %s197_s22 = scalar_lea.vmem [#allocation2], %s598_s11  ;;  %s205_s13 = int_to_ptr.hbm [resolvable:$true] %s204_s13 }
  0x27   : > { %s206_s1 = sshll.u32 %s197_s22, 4  ;;  %s194_s9 = scalar_lea.sflag [#allocation3], %s1009_s5  ;;  %s207_s1 = int_to_ptr.vmem [resolvable:$true] %s206_s1 }
  0x28   : > { %625 = dma.hbm_to_vmem [thread:$0]  (!%p1015_p0), %s205_s13, 128, %s207_s1, %s194_s9, %s912_s25, %s912_s25, %s913_s26  }
  0x29   : > { %s247_s2 = sshll.u32 %s245_s23, 4  ;;  %s240_s17 = scalar_lea.vmem [#allocation7], %s1181_s29  ;;  %s248_s2 = int_to_ptr.hbm [resolvable:$true] %s247_s2 }
  0x2a   : > { %s249_s20 = sshll.u32 %s240_s17, 4  ;;  %258 = sbr.rel (%p1032_p3) target bundleno = 127 (0x7f), region = 32  ;;  %s250_s20 = int_to_ptr.vmem [resolvable:$true] %s249_s20 }
  0x2b   : > { %631 = dma.hbm_to_vmem [thread:$0]  (!%p1015_p0), %s248_s2, 32, %s250_s20, %s217_s24  }
  0x2c   : > { %s1051_s7 = sand.u32 (!%p1032_p3), 1, %s894_s16  }
  0x2d   : > { %s606_s11 = sshll.u32 (!%p1032_p3), %s1051_s7, 3  ;;  %s261_s12 = scalar_lea.sflag (!%p1032_p3), [#allocation3], %s1051_s7 }
  0x2e   : > { %s264_s1 = scalar_lea.vmem (!%p1032_p3), [#allocation2], %s606_s11 }
  0x2f   : > { %873 = dma.done.wait (%p991_p8), %s261_s12, 128  }
  0x30   : > { %875 = vsyncadd (%p991_p8), %s261_s12, 4294967168  ;;  %s270_s2 = sand.u32 1, %s971_s21   ;;  %s607_s17 = sshll.u32 %s1051_s7, 1 }
  0x31   : > { %s271_s20 = scalar_lea.sflag [#allocation6], %s270_s2  ;;  %s274_s23 = scalar_lea.vmem [#allocation5], %s607_s17 }
  0x32   : > { %877 = dma.done.wait (%p991_p8), %s271_s20, 64  }
  0x33   : > { %879 = vsyncadd (%p991_p8), %s271_s20, 4294967232  ;;  %s1068_s29 = scalar_lea.vmem [#allocation8], %s1051_s7  ;;  %v914_v0 = vmov 0.0   ;;  %s1072_s5 = scalar_lea.vmem [#allocation9], %s1051_s7  ;;  %vm334_vm0 = vcmask 1041408  }
  0x34   : > { %327 = vst [vmem:[%s1068_s29] sm:$0x1] %v914_v0  ;;  %v329_v1 = vld [vmem:[%s264_s1] sm:$0x3]  ;;  %v330_v2 = vld [vmem:[%s264_s1 + $0x2] sm:$0x3]  ;;  %s284_s21 = scalar_lea.vmem [#allocation7], %s607_s17  ;;  %s428_s24 = scalar_lea.hbm %s1160_s3, %s902_s18 }
  0x35   : > { %328 = vst [vmem:[%s1072_s5] sm:$0x1] %v914_v0  ;;  %v331_v3 = vld [vmem:[%s264_s1 + $0x4] sm:$0x3]  ;;  %v332_v4 = vld [vmem:[%s264_s1 + $0x6] sm:$0x3]  ;;  %v335_v5 = vsel %vm334_vm0, %v329_v1, -inf  ;;  %s441_s22 = scalar_lea.hbm %s1161_s4, %s902_s18 }
  0x36   : > { %v336_v6 = vsel %vm334_vm0, %v330_v2, -inf  ;;  %v337_v7 = vsel %vm334_vm0, %v331_v3, -inf  ;;  %v338_v8 = vsel %vm334_vm0, %v332_v4, -inf  ;;  %v333_v20 = vld [vmem:[%s274_s23] sm:$0x3]  ;;  %v379_v37 = vsel %vm334_vm0, %v329_v1, 0.0 }
  0x37   : > { %v339_v9 = vmax.f32 %v335_v5, %v336_v6  ;;  %v340_v10 = vmax.f32 %v337_v7, %v338_v8  ;;  %vm364_vm1 = vcmp.eq.s32.totalorder %v333_v20, 0  ;;  %vm365_vm2 = vcmp.eq.s32.totalorder %v333_v20, 1  ;;  %v392_v58 = vld [vmem:[%s284_s21] sm:$0x3]  ;;  %s430_s10 = sshll.u32 %s1068_s29, 4  ;;  %s432_s14 = sshll.u32 %s428_s24, 4  ;;  %s431_s10 = int_to_ptr.vmem [resolvable:$true] %s430_s10  ;;  %s433_s14 = int_to_ptr.hbm [resolvable:$true] %s432_s14 }
  0x38   : > { %v368_v26 = vsel %vm364_vm1, %v329_v1, 0.0  ;;  %v369_v27 = vsel %vm365_vm2, %v330_v2, 0.0  ;;  %vm366_vm3 = vcmp.eq.s32.totalorder %v333_v20, 2  ;;  %vm367_vm4 = vcmp.eq.s32.totalorder %v333_v20, 3  ;;  %s443_s9 = sshll.u32 %s1072_s5, 4  ;;  %s1107_s25 = sshll.u32 %s441_s22, 4  ;;  %s444_s9 = int_to_ptr.vmem [resolvable:$true] %s443_s9  ;;  %s446_s25 = int_to_ptr.hbm [resolvable:$true] %s1107_s25 }
  0x39   : > { %v341_v11 = vmax.f32 %v339_v9, %v340_v10  ;;  %v372_v33 = vsel %vm334_vm0, %v368_v26, 0.0  ;;  %v373_v34 = vsel %vm334_vm0, %v369_v27, 0.0  ;;  %v370_v35 = vsel %vm366_vm3, %v331_v3, 0.0  ;;  %s416_s26 = scalar_lea.sflag [#allocation4], %s1051_s7  ;;  %s806_s11 = sshra.s32 %s433_s14, 4  ;;  %s807_s11 = int_to_ptr.hbm [resolvable:$true] %s806_s11 }
  0x3a   : > { %v380_v38 = vsel %vm334_vm0, %v330_v2, 0.0  ;;  %v374_v39 = vadd.f32 %v373_v34, %v372_v33  ;;  %v375_v40 = vsel %vm334_vm0, %v370_v35, 0.0  ;;  %v371_v41 = vsel %vm367_vm4, %v332_v4, 0.0  ;;  %s808_s12 = scalar_lea.hbm %s807_s11, 1  ;;  %s812_s2 = scalar_lea.hbm %s1160_s3, 2 }
  0x3b   : > { %v342_v12 = vsub.f32 %v329_v1, %v341_v11  ;;  %v343_v13 = vsub.f32 %v330_v2, %v341_v11  ;;  %v344_v14 = vsub.f32 %v331_v3, %v341_v11  ;;  %v345_v15 = vsub.f32 %v332_v4, %v341_v11  ;;  %v394_v8 = vld [vmem:[%s1068_s29] sm:$0x1]  ;;  %p809_p4 = scmp.ne.s32.totalorder %s807_s11, %s808_s12  ;;  %p813_p7 = scmp.lt.s32.totalorder %s807_s11, %s1160_s3 }
  0x3c   : > { %v381_v42 = vadd.f32 %v380_v38, %v379_v37  ;;  %v382_v43 = vsel %vm334_vm0, %v331_v3, 0.0  ;;  %v376_v44 = vadd.f32 %v375_v40, %v374_v39  ;;  %v377_v45 = vsel %vm334_vm0, %v371_v41, 0.0  ;;  %p814_p8 = scmp.lt.s32.totalorder %s812_s2, %s808_s12 }
  0x3d   : > { %v346_v16 = vmul.f32 1.442695, %v342_v12  ;;  %v348_v17 = vmul.f32 1.442695, %v343_v13  ;;  %v350_v18 = vmul.f32 1.442695, %v344_v14  ;;  %p810_p5 = pnand %p809_p4, %p995_p9 }
  0x3e   : > { %v352_v19 = vmul.f32 1.442695, %v345_v15  ;;  %v383_v46 = vadd.f32 %v382_v43, %v381_v42  ;;  %v384_v48 = vsel %vm334_vm0, %v332_v4, 0.0  ;;  %v378_v50 = vadd.f32 %v377_v45, %v376_v44  ;;  %v404_v13 = vld [vmem:[%s1072_s5] sm:$0x1]  ;;  %p815_p10 = por %p814_p8, %p813_p7 }
  0x3f   : > { %692 = vpow2.f32 %v346_v16  ;;  %p811_p6 = pneg %p810_p5 }
  0x40   : > { %694 = vpow2.f32 %v348_v17  ;;  %v385_v52 = vadd.f32 %v384_v48, %v383_v46 }
  0x41   : > { %696 = vpow2.f32 %v350_v18  ;;  %p816_p13 = pnand %p815_p10, %p811_p6 }
  0x42   : > { %698 = vpow2.f32 %v352_v19 }
  0x45   : > { %v693_v21 = vpop.eup %692 }
  0x46   : > { %v695_v22 = vpop.eup %694  ;;  %v354_v23 = vsel %vm334_vm0, %v693_v21, 0.0 }
  0x47   : > { %v697_v24 = vpop.eup %696  ;;  %v355_v25 = vsel %vm334_vm0, %v695_v22, 0.0 }
  0x48   : > { %v699_v28 = vpop.eup %698  ;;  %v356_v29 = vadd.f32 %v355_v25, %v354_v23  ;;  %v357_v30 = vsel %vm334_vm0, %v697_v24, 0.0 }
  0x49   : > { %v359_v31 = vsel %vm334_vm0, %v699_v28, 0.0 }
  0x4a   : > { %v358_v32 = vadd.f32 %v357_v30, %v356_v29 }
  0x4c   : > { %v360_v36 = vadd.f32 %v359_v31, %v358_v32 }
  0x4e   : > { %700 = vlog2.f32 %v360_v36 }
  0x54   : > { %v701_v47 = vpop.eup %700 }
  0x55   : > { %v362_v49 = vmul.f32 0.6931472, %v701_v47 }
  0x57   : > { %v363_v51 = vadd.f32 %v362_v49, %v341_v11 }
  0x59   : > { %v386_v53 = vsub.f32 %v363_v51, %v378_v50  ;;  %v387_v54 = vmul.f32 4.0, %v363_v51 }
  0x5b   : > { %v388_v55 = vsub.f32 %v387_v54, %v385_v52  ;;  %v389_v56 = vmul.f32 0.95, %v386_v53 }
  0x5d   : > { %v390_v57 = vmul.f32 0.0125, %v388_v55 }
  0x5f   : > { %v391_v59 = vadd.f32 %v390_v57, %v389_v56 }
  0x61   : > { %v395_v60 = vsel %vm334_vm0, %v391_v59, 0.0  ;;  %v393_v61 = vsub.f32 %v392_v58, %v391_v59 }
  0x62   : > { %v396_v62 = vrot.slane %v395_v60, 4 }
  0x63   : > { %v405_v63 = vmul.f32 %v393_v61, %v393_v61 }
  0x64   : > { %v397_v0 = vadd.f32 %v396_v62, %v395_v60 }
  0x65   : > { %v406_v1 = vsel %vm334_vm0, %v405_v63, 0.0 }
  0x66   : > { %v398_v2 = vrot.slane %v397_v0, 2  ;;  %v407_v3 = vrot.slane %v406_v1, 4 }
  0x68   : > { %v399_v4 = vadd.f32 %v398_v2, %v397_v0  ;;  %v408_v5 = vadd.f32 %v407_v3, %v406_v1 }
  0x6a   : > { %v400_v6 = vrot.slane %v399_v4, 1  ;;  %v409_v7 = vrot.slane %v408_v5, 2 }
  0x6c   : > { %v401_v9 = vadd.f32 %v400_v6, %v399_v4  ;;  %v410_v10 = vadd.f32 %v409_v7, %v408_v5 }
  0x6e   : > { %v402_v11 = vadd.f32 %v401_v9, %v394_v8  ;;  %v411_v12 = vrot.slane %v410_v10, 1 }
  0x70   : > { %403 = vst [vmem:[%s1068_s29] sm:$0x1] %v402_v11  ;;  %v412_v14 = vadd.f32 %v411_v12, %v410_v10 }
  0x71   : > { %819 = shalt.err (!%p816_p13)
}
  0x72   : > { %618 = dma.vmem_to_hbm [thread:$0]  (%p995_p9), %s431_s10, 16, %s433_s14, %s416_s26   ;;  %v413_v15 = vadd.f32 %v412_v14, %v404_v13 }
  0x73   : > { %s420_s23 = scalar_lea.sflag [#allocation10], %s1051_s7  ;;  %s834_s29 = sshra.s32 %s446_s25, 4  ;;  %s835_s29 = int_to_ptr.hbm [resolvable:$true] %s834_s29 }
  0x74   : > { %414 = vst [vmem:[%s1072_s5] sm:$0x1] %v413_v15  ;;  %s836_s21 = scalar_lea.hbm %s835_s29, 1  ;;  %s840_s24 = scalar_lea.hbm %s1161_s4, 2 }
  0x75   : > { %p837_p0 = scmp.ne.s32.totalorder %s835_s29, %s836_s21  ;;  %p841_p3 = scmp.lt.s32.totalorder %s835_s29, %s1161_s4 }
  0x76   : > { %p842_p4 = scmp.lt.s32.totalorder %s840_s24, %s836_s21 }
  0x77   : > { %p838_p1 = pnand %p837_p0, %p995_p9 }
  0x78   : > { %p843_p5 = por %p842_p4, %p841_p3 }
  0x79   : > { %p839_p2 = pneg %p838_p1 }
  0x7b   : > { %p844_p6 = pnand %p843_p5, %p839_p2 }
  0x7d   : > { %847 = shalt.err (!%p844_p6)
}
  0x7e   : > { %619 = dma.vmem_to_hbm [thread:$0]  (%p995_p9), %s444_s9, 16, %s446_s25, %s420_s23  }
  0x7f PF: > { %s1182_s7 = sld [smem:[#allocation16_spill]]  ;;  %s457_s5 = sand.u32 1, %s890_s15  }
  0x80   : > { %p633_p7 = pnand %p597_p12, %p1002_p11  ;;  %s458_s10 = scalar_lea.sflag [#allocation4], %s457_s5 }
  0x82   : > { %p634_p8 = pneg %p633_p7 }
  0x84   : > { %881 = dma.done.wait (%p634_p8), %s458_s10, 16  }
  0x85   : > { %883 = vsyncadd (%p634_p8), %s458_s10, 4294967280  ;;  %s467_s14 = scalar_lea.sflag [#allocation10], %s457_s5 }
  0x86   : > { %885 = dma.done.wait (%p634_p8), %s467_s14, 16  }
  0x87   : > { %887 = vsyncadd (%p634_p8), %s467_s14, 4294967280  ;;  %s27_s20 = sadd.s32 1, %s1182_s7   ;;  %s1183_s28 = sld [smem:[#allocation15_spill]] }
  0x88   : > { %p24_p10 = scmp.ge.s32.totalorder %s27_s20, 4   ;;  %s1184_s17 = sld [smem:[#allocation18_spill]] }
  0x89   : > { %s1185_s22 = sld [smem:[#allocation17_spill]]  ;;  %s1186_s15 = smov %s894_s16 }
  0x8a   : > { %s1188_s18 = smov %s906_s19 }
  0x8b   :  { %26 = sbr.rel (!%p24_p10) target bundleno = 13 (0xd), region = 122 }
  0x8d   : > { %s1187_s16 = smov %s1183_s28 }
  0x8f   : > { %s1189_s19 = smov %s1185_s22 }
  0x90   :  { %472 = vsyncpa [#allocation3], 1 }
  0x91   :  { %474 = vsyncpa [#allocation3 + $0x1], 1 }
  0x92   :  { %475 = vsyncpa [#allocation6], 1 }
  0x93   :  { %477 = vsyncpa [#allocation6 + $0x1], 1 }
  0x94   :  { %478 = vsyncpa [#allocation4], 1 }
  0x95   :  { %480 = vsyncpa [#allocation4 + $0x1], 1 }
  0x96   :  { %481 = vsyncpa [#allocation10], 1 }
  0x97   :  { %483 = vsyncpa [#allocation10 + $0x1], 1 }

</bundles_post_ra>
